<compile_context>
chip_gen: v7x
topology: tpu7x:2x2x1
jax: 0.10.0
libtpu: 0.0.40
codegen_flags: <defaults>
</compile_context>

<pallas_src>
import functools

import jax
import jax.numpy as jnp
from jax.experimental import pallas as pl
from jax.experimental.pallas import tpu as pltpu


def _round_up(x, m):
    return (x + m - 1) // m * m


def _proj_loss_kernel(zk_ref, w1_ref, w0_ref, h_ref, out_ref,
                      a_acc, b_acc, s1_acc, s0_acc,
                      *, n_total, tn, needs_mask):
    """Streaming projection-loss reduction.

    zk_ref, w1_ref, w0_ref: (tn, K) f32 VMEM tiles.
    h_ref:                  (tn, D) f32 VMEM tile.
    out_ref:                (1, 1)  f32 (written in the finalize step only).
    a_acc, b_acc:           (1, D)  f32 VMEM accumulators.
    s1_acc, s0_acc:         (1, 1)  f32 VMEM accumulators.
    """
    i = pl.program_id(0)

    @pl.when(i == 0)
    def _init():
        a_acc[...] = jnp.zeros_like(a_acc)
        b_acc[...] = jnp.zeros_like(b_acc)
        s1_acc[...] = jnp.zeros_like(s1_acc)
        s0_acc[...] = jnp.zeros_like(s0_acc)

    zk = zk_ref[...]
    w1 = w1_ref[...]
    w0 = w0_ref[...]
    h = h_ref[...]

    if needs_mask:
        # Last tile is partial: zero contributions from rows >= n_total
        # (also guards against garbage/NaN in the out-of-bounds block region).
        row = jax.lax.broadcasted_iota(jnp.int32, (tn, 1), 0) + i * tn
        valid = row < n_total
        wa = jnp.where(valid, w1 * zk, 0.0)
        wb = jnp.where(valid, w0 * (1.0 - zk), 0.0)
        hm = jnp.where(valid, h, 0.0)
    else:
        wa = w1 * zk
        wb = w0 * (1.0 - zk)
        hm = h

    # Pure VPU/XLU work; no MXU.
    a_acc[...] += jnp.sum(wa * hm, axis=0, keepdims=True)   # (1, D)
    b_acc[...] += jnp.sum(wb * hm, axis=0, keepdims=True)   # (1, D)
    s1_acc[...] += jnp.sum(wa, keepdims=True)                # (1, 1)
    s0_acc[...] += jnp.sum(wb, keepdims=True)                # (1, 1)

    @pl.when(i == pl.num_programs(0) - 1)
    def _finalize():
        # Reciprocal + multiply instead of two divides (EUP path, exact).
        # TODO(synk): PyTorch original has no eps guard, so an all-treated /
        # all-control batch yields inf/NaN there too; semantics preserved.
        inv1 = pl.reciprocal(s1_acc[...])
        inv0 = pl.reciprocal(s0_acc[...])
        diff = a_acc[...] * inv1 - b_acc[...] * inv0          # (1, D)
        out_ref[...] = jnp.sqrt(jnp.sum(diff * diff, keepdims=True))


def protected_causal_inference_forward(
    h,
    z=None,
    x=None,
    y=None,
    propensity_scores=None,
    turn_protected_projection_on=True,
    use_only_projection_penalty=False,
    penalize_fit=None,
    current_epoch=None,
    group_indices=None,
):
    """JAX/Pallas port of ProtectedCausalInferenceLayer.forward.

    Returns (h, projection_loss).
    # TODO(synk): the original source falls off the end (returns None) when
    # turn_protected_projection_on=True and use_only_projection_penalty=False;
    # we return (h, projection_loss) in that case instead.
    """
    if not (turn_protected_projection_on or use_only_projection_penalty):
        return h, jnp.float32(0.0)
    if z.ndim != 3:
        raise ValueError("Expected a 3D array for z")

    # torch's h.squeeze(dim=1): drop dim 1 only if its size is 1.
    h_sq = jnp.squeeze(h, axis=1) if (h.ndim >= 2 and h.shape[1] == 1) else h
    h_sq = h_sq.astype(jnp.float32)
    n, d = h_sq.shape
    k = z.shape[2]
    if not (k == 1 or k == d):
        raise ValueError(f"weights*(h) broadcast requires K==1 or K==D, got K={k}, D={d}")

    # Thin (N, K) slices — no concatenation / extra HBM slab.
    zk = z[:, 0, :].reshape(n, k).astype(jnp.float32)
    w1 = propensity_scores[:, :, 0].reshape(n, k).astype(jnp.float32)
    w0 = propensity_scores[:, :, 1].reshape(n, k).astype(jnp.float32)

    # Tile the batch axis. Size against the padded-lane VMEM footprint so the
    # double-buffered working set stays under ~16 MiB (fits v7x 32 MiB scoped).
    lane_d = _round_up(d, 128)
    lane_k = _round_up(k, 128)
    padded_row_bytes = 4 * (lane_d + 3 * lane_k)
    per_buffer_budget = 8 * 1024 * 1024
    tn = max(8, (per_buffer_budget // padded_row_bytes) // 8 * 8)
    if n <= tn:
        tn = n  # single block == full array extent (always a legal block shape)
    grid = (pl.cdiv(n, tn),)
    needs_mask = (n % tn) != 0

    kernel = functools.partial(
        _proj_loss_kernel, n_total=n, tn=tn, needs_mask=needs_mask)

    cost = pl.CostEstimate(
        flops=int(6 * n * max(k, d)),
        transcendentals=3,  # 2 reciprocals + 1 sqrt in the finalize
        bytes_accessed=int(4 * n * (d + 3 * k) + 4),
    )

    loss = pl.pallas_call(
        kernel,
        out_shape=jax.ShapeDtypeStruct((1, 1), jnp.float32),
        grid_spec=pltpu.PrefetchScalarGridSpec(
            num_scalar_prefetch=0,
            grid=grid,
            in_specs=[
                pl.BlockSpec((tn, k), lambda i: (i, 0)),   # zk
                pl.BlockSpec((tn, k), lambda i: (i, 0)),   # w1
                pl.BlockSpec((tn, k), lambda i: (i, 0)),   # w0
                pl.BlockSpec((tn, d), lambda i: (i, 0)),   # h
            ],
            # Same block index across the whole grid -> output stays resident.
            out_specs=pl.BlockSpec((1, 1), lambda i: (0, 0)),
            scratch_shapes=[
                pltpu.VMEM((1, d), jnp.float32),   # A accumulator
                pltpu.VMEM((1, d), jnp.float32),   # B accumulator
                pltpu.VMEM((1, 1), jnp.float32),   # s1
                pltpu.VMEM((1, 1), jnp.float32),   # s0
            ],
        ),
        compiler_params=pltpu.CompilerParams(
            dimension_semantics=("arbitrary",),
            vmem_limit_bytes=32 * 1024 * 1024,
        ),
        cost_estimate=cost,
    )(zk, w1, w0, h_sq)

    # TODO(synk): emitting the scalar through an SMEM out-spec would avoid the
    # padded (8,128) vst; kept in VMEM for guaranteed lowering.
    return h, loss[0, 0]


def reference_forward(h, z, propensity_scores):
    """Pure-JAX mirror of the PyTorch forward (projection-penalty branch)."""
    w1 = propensity_scores[:, :, 0]
    w0 = propensity_scores[:, :, 1]
    zk = z[:, 0, :]
    w1z = w1 * zk
    w0znot = w0 * (1.0 - zk)
    weights = w1z / jnp.sum(w1z) - w0znot / jnp.sum(w0znot)
    h_sq = jnp.squeeze(h, axis=1) if (h.ndim >= 2 and h.shape[1] == 1) else h
    weighted_h = weights * h_sq
    return jnp.sqrt(jnp.sum(jnp.sum(weighted_h, axis=0) ** 2))


if __name__ == "__main__":
    key = jax.random.PRNGKey(0)
    k_h, k_p = jax.random.split(key)

    N, D = 8, 32
    h = jax.random.normal(k_h, (N, 1, D), jnp.float32)            # (N, 1, D)
    # Deterministic mixed treatment assignment (both groups non-empty).
    z = jnp.array([1, 0, 1, 0, 1, 1, 0, 0], jnp.float32).reshape(N, 1, 1)
    p1 = jax.random.uniform(k_p, (N, 1, 1), jnp.float32, 0.05, 0.95)
    propensity_scores = jnp.concatenate([p1, 1.0 - p1], axis=2)   # (N, 1, 2)

    fwd = jax.jit(
        lambda h_, z_, p_: protected_causal_inference_forward(
            h_,
            z=z_,
            propensity_scores=p_,
            turn_protected_projection_on=True,
            use_only_projection_penalty=True,
        )
    )
    h_out, loss = fwd(h, z, propensity_scores)
    h_out, loss = jax.block_until_ready((h_out, loss))

    ref_loss = reference_forward(h, z, propensity_scores)
    assert h_out.shape == h.shape
    assert jnp.allclose(h_out, h), "h pass-through mismatch"
    assert jnp.allclose(loss, ref_loss, atol=1e-5, rtol=1e-5), (
        f"projection loss mismatch: {loss} vs {ref_loss}"
    )

    print("KERNEL_OK")
</pallas_src>

<mosaic_0001>
module attributes {stable_mosaic.version = 11 : i64} {
  func.func @_proj_loss_kernel(%arg0: i32, %arg1: memref<8x1xf32, #tpu.memory_space<vmem>>, %arg2: memref<8x1xf32, #tpu.memory_space<vmem>>, %arg3: memref<8x1xf32, #tpu.memory_space<vmem>>, %arg4: memref<8x32xf32, #tpu.memory_space<vmem>>, %arg5: memref<1x1xf32, #tpu.memory_space<vmem>>, %arg6: memref<1x32xf32, #tpu.memory_space<vmem>>, %arg7: memref<1x32xf32, #tpu.memory_space<vmem>>, %arg8: memref<1x1xf32, #tpu.memory_space<vmem>>, %arg9: memref<1x1xf32, #tpu.memory_space<vmem>>) attributes {dimension_semantics = [#tpu.dimension_semantics<arbitrary>], iteration_bounds = array<i64: 1>, scalar_prefetch = 0 : i64, scratch_operands = 4 : i64, tpu.core_type = #tpu.core_type<tc>, window_params = [{transform_indices = @transform_0, window_bounds = array<i64: 8, 1>}, {transform_indices = @transform_1, window_bounds = array<i64: 8, 1>}, {transform_indices = @transform_2, window_bounds = array<i64: 8, 1>}, {transform_indices = @transform_3, window_bounds = array<i64: 8, 32>}, {pipeline_mode = #tpu.pipeline_mode<synchronous>, transform_indices = @transform_4, window_bounds = array<i64: 1, 1>}]} {
    %c0_i32 = arith.constant 0 : i32
    %0 = arith.cmpi eq, %arg0, %c0_i32 : i32
    %1 = arith.extui %0 : i1 to i32
    %c0_i32_0 = arith.constant 0 : i32
    %2 = arith.cmpi ne, %1, %c0_i32_0 : i32
    scf.if %2 {
      %cst_30 = arith.constant 0.000000e+00 : f32
      %44 = vector.broadcast %cst_30 : f32 to vector<1x32xf32>
      %c0_31 = arith.constant 0 : index
      %c0_32 = arith.constant 0 : index
      %45 = vector.load %arg6[%c0_31, %c0_32] : memref<1x32xf32, #tpu.memory_space<vmem>>, vector<1x32xf32>
      tpu.vector_store %arg6[%c0_31, %c0_32], %44 {strides = array<i32>} : memref<1x32xf32, #tpu.memory_space<vmem>>, vector<1x32xf32>,
      %cst_33 = arith.constant 0.000000e+00 : f32
      %46 = vector.broadcast %cst_33 : f32 to vector<1x32xf32>
      %c0_34 = arith.constant 0 : index
      %c0_35 = arith.constant 0 : index
      %47 = vector.load %arg7[%c0_34, %c0_35] : memref<1x32xf32, #tpu.memory_space<vmem>>, vector<1x32xf32>
      tpu.vector_store %arg7[%c0_34, %c0_35], %46 {strides = array<i32>} : memref<1x32xf32, #tpu.memory_space<vmem>>, vector<1x32xf32>,
      %cst_36 = arith.constant 0.000000e+00 : f32
      %48 = vector.broadcast %cst_36 : f32 to vector<1x1xf32>
      %c0_37 = arith.constant 0 : index
      %c0_38 = arith.constant 0 : index
      %49 = vector.load %arg8[%c0_37, %c0_38] : memref<1x1xf32, #tpu.memory_space<vmem>>, vector<1x1xf32>
      tpu.vector_store %arg8[%c0_37, %c0_38], %48 {strides = array<i32>} : memref<1x1xf32, #tpu.memory_space<vmem>>, vector<1x1xf32>,
      %cst_39 = arith.constant 0.000000e+00 : f32
      %50 = vector.broadcast %cst_39 : f32 to vector<1x1xf32>
      %c0_40 = arith.constant 0 : index
      %c0_41 = arith.constant 0 : index
      %51 = vector.load %arg9[%c0_40, %c0_41] : memref<1x1xf32, #tpu.memory_space<vmem>>, vector<1x1xf32>
      tpu.vector_store %arg9[%c0_40, %c0_41], %50 {strides = array<i32>} : memref<1x1xf32, #tpu.memory_space<vmem>>, vector<1x1xf32>,
    } else {
    }
    %c0 = arith.constant 0 : index
    %c0_1 = arith.constant 0 : index
    %3 = vector.load %arg1[%c0, %c0_1] : memref<8x1xf32, #tpu.memory_space<vmem>>, vector<8x1xf32>
    %c0_2 = arith.constant 0 : index
    %c0_3 = arith.constant 0 : index
    %4 = vector.load %arg2[%c0_2, %c0_3] : memref<8x1xf32, #tpu.memory_space<vmem>>, vector<8x1xf32>
    %c0_4 = arith.constant 0 : index
    %c0_5 = arith.constant 0 : index
    %5 = vector.load %arg3[%c0_4, %c0_5] : memref<8x1xf32, #tpu.memory_space<vmem>>, vector<8x1xf32>
    %c0_6 = arith.constant 0 : index
    %c0_7 = arith.constant 0 : index
    %6 = vector.load %arg4[%c0_6, %c0_7] : memref<8x32xf32, #tpu.memory_space<vmem>>, vector<8x32xf32>
    %7 = arith.mulf %4, %3 : vector<8x1xf32>
    %cst = arith.constant 1.000000e+00 : f32
    %8 = vector.broadcast %cst : f32 to vector<8x1xf32>
    %9 = arith.subf %8, %3 : vector<8x1xf32>
    %10 = arith.mulf %5, %9 : vector<8x1xf32>
    %c0_8 = arith.constant 0 : index
    %c0_9 = arith.constant 0 : index
    %11 = vector.load %arg6[%c0_8, %c0_9] : memref<1x32xf32, #tpu.memory_space<vmem>>, vector<1x32xf32>
    %12 = vector.broadcast %7 : vector<8x1xf32> to vector<8x32xf32>
    %13 = arith.mulf %12, %6 : vector<8x32xf32>
    %cst_10 = arith.constant dense<0.000000e+00> : vector<32xf32>
    %14 = vector.multi_reduction <add>, %13, %cst_10 [0] : vector<8x32xf32> to vector<32xf32>
    %15 = vector.shape_cast %14 : vector<32xf32> to vector<1x32xf32>
    %16 = arith.addf %11, %15 : vector<1x32xf32>
    %c0_11 = arith.constant 0 : index
    %c0_12 = arith.constant 0 : index
    %17 = vector.load %arg6[%c0_11, %c0_12] : memref<1x32xf32, #tpu.memory_space<vmem>>, vector<1x32xf32>
    tpu.vector_store %arg6[%c0_11, %c0_12], %16 {strides = array<i32>} : memref<1x32xf32, #tpu.memory_space<vmem>>, vector<1x32xf32>,
    %c0_13 = arith.constant 0 : index
    %c0_14 = arith.constant 0 : index
    %18 = vector.load %arg7[%c0_13, %c0_14] : memref<1x32xf32, #tpu.memory_space<vmem>>, vector<1x32xf32>
    %19 = vector.broadcast %10 : vector<8x1xf32> to vector<8x32xf32>
    %20 = arith.mulf %19, %6 : vector<8x32xf32>
    %cst_15 = arith.constant dense<0.000000e+00> : vector<32xf32>
    %21 = vector.multi_reduction <add>, %20, %cst_15 [0] : vector<8x32xf32> to vector<32xf32>
    %22 = vector.shape_cast %21 : vector<32xf32> to vector<1x32xf32>
    %23 = arith.addf %18, %22 : vector<1x32xf32>
    %c0_16 = arith.constant 0 : index
    %c0_17 = arith.constant 0 : index
    %24 = vector.load %arg7[%c0_16, %c0_17] : memref<1x32xf32, #tpu.memory_space<vmem>>, vector<1x32xf32>
    tpu.vector_store %arg7[%c0_16, %c0_17], %23 {strides = array<i32>} : memref<1x32xf32, #tpu.memory_space<vmem>>, vector<1x32xf32>,
    %c0_18 = arith.constant 0 : index
    %c0_19 = arith.constant 0 : index
    %25 = vector.load %arg8[%c0_18, %c0_19] : memref<1x1xf32, #tpu.memory_space<vmem>>, vector<1x1xf32>
    %26 = vector.shape_cast %7 : vector<8x1xf32> to vector<1x8x1xf32>
    %cst_20 = arith.constant dense<0.000000e+00> : vector<1xf32>
    %27 = vector.multi_reduction <add>, %26, %cst_20 [1, 2] : vector<1x8x1xf32> to vector<1xf32>
    %28 = vector.shape_cast %27 : vector<1xf32> to vector<1x1x1xf32>
    %29 = vector.extract %28[0, 0, 0] : f32 from vector<1x1x1xf32>
    %30 = vector.broadcast %29 : f32 to vector<1x1xf32>
    %31 = arith.addf %25, %30 : vector<1x1xf32>
    %c0_21 = arith.constant 0 : index
    %c0_22 = arith.constant 0 : index
    %32 = vector.load %arg8[%c0_21, %c0_22] : memref<1x1xf32, #tpu.memory_space<vmem>>, vector<1x1xf32>
    tpu.vector_store %arg8[%c0_21, %c0_22], %31 {strides = array<i32>} : memref<1x1xf32, #tpu.memory_space<vmem>>, vector<1x1xf32>,
    %c0_23 = arith.constant 0 : index
    %c0_24 = arith.constant 0 : index
    %33 = vector.load %arg9[%c0_23, %c0_24] : memref<1x1xf32, #tpu.memory_space<vmem>>, vector<1x1xf32>
    %34 = vector.shape_cast %10 : vector<8x1xf32> to vector<1x8x1xf32>
    %cst_25 = arith.constant dense<0.000000e+00> : vector<1xf32>
    %35 = vector.multi_reduction <add>, %34, %cst_25 [1, 2] : vector<1x8x1xf32> to vector<1xf32>
    %36 = vector.shape_cast %35 : vector<1xf32> to vector<1x1x1xf32>
    %37 = vector.extract %36[0, 0, 0] : f32 from vector<1x1x1xf32>
    %38 = vector.broadcast %37 : f32 to vector<1x1xf32>
    %39 = arith.addf %33, %38 : vector<1x1xf32>
    %c0_26 = arith.constant 0 : index
    %c0_27 = arith.constant 0 : index
    %40 = vector.load %arg9[%c0_26, %c0_27] : memref<1x1xf32, #tpu.memory_space<vmem>>, vector<1x1xf32>
    tpu.vector_store %arg9[%c0_26, %c0_27], %39 {strides = array<i32>} : memref<1x1xf32, #tpu.memory_space<vmem>>, vector<1x1xf32>,
    %c0_i32_28 = arith.constant 0 : i32
    %41 = arith.cmpi eq, %arg0, %c0_i32_28 : i32
    %42 = arith.extui %41 : i1 to i32
    %c0_i32_29 = arith.constant 0 : i32
    %43 = arith.cmpi ne, %42, %c0_i32_29 : i32
    scf.if %43 {
      %c0_30 = arith.constant 0 : index
      %c0_31 = arith.constant 0 : index
      %44 = vector.load %arg8[%c0_30, %c0_31] : memref<1x1xf32, #tpu.memory_space<vmem>>, vector<1x1xf32>
      %45 = tpu.reciprocal %44 : vector<1x1xf32> -> vector<1x1xf32>
      %c0_32 = arith.constant 0 : index
      %c0_33 = arith.constant 0 : index
      %46 = vector.load %arg9[%c0_32, %c0_33] : memref<1x1xf32, #tpu.memory_space<vmem>>, vector<1x1xf32>
      %47 = tpu.reciprocal %46 : vector<1x1xf32> -> vector<1x1xf32>
      %c0_34 = arith.constant 0 : index
      %c0_35 = arith.constant 0 : index
      %48 = vector.load %arg6[%c0_34, %c0_35] : memref<1x32xf32, #tpu.memory_space<vmem>>, vector<1x32xf32>
      %49 = vector.broadcast %45 : vector<1x1xf32> to vector<1x32xf32>
      %50 = arith.mulf %48, %49 : vector<1x32xf32>
      %c0_36 = arith.constant 0 : index
      %c0_37 = arith.constant 0 : index
      %51 = vector.load %arg7[%c0_36, %c0_37] : memref<1x32xf32, #tpu.memory_space<vmem>>, vector<1x32xf32>
      %52 = vector.broadcast %47 : vector<1x1xf32> to vector<1x32xf32>
      %53 = arith.mulf %51, %52 : vector<1x32xf32>
      %54 = arith.subf %50, %53 : vector<1x32xf32>
      %55 = arith.mulf %54, %54 : vector<1x32xf32>
      %56 = vector.shape_cast %55 : vector<1x32xf32> to vector<1x1x32xf32>
      %cst_38 = arith.constant dense<0.000000e+00> : vector<1xf32>
      %57 = vector.multi_reduction <add>, %56, %cst_38 [1, 2] : vector<1x1x32xf32> to vector<1xf32>
      %58 = vector.shape_cast %57 : vector<1xf32> to vector<1x1x1xf32>
      %59 = vector.extract %58[0, 0, 0] : f32 from vector<1x1x1xf32>
      %60 = vector.broadcast %59 : f32 to vector<1x1xf32>
      %61 = math.sqrt %60 : vector<1x1xf32>
      %c0_39 = arith.constant 0 : index
      %c0_40 = arith.constant 0 : index
      %62 = vector.load %arg5[%c0_39, %c0_40] : memref<1x1xf32, #tpu.memory_space<vmem>>, vector<1x1xf32>
      tpu.vector_store %arg5[%c0_39, %c0_40], %61 {strides = array<i32>} : memref<1x1xf32, #tpu.memory_space<vmem>>, vector<1x1xf32>,
    } else {
    }
    return
  }
  func.func @transform_0(%arg0: i32) -> (i32, i32) {
    %c0_i32 = arith.constant 0 : i32
    %c0_i32_0 = arith.constant 0 : i32
    return %arg0, %c0_i32 : i32, i32
  }
  func.func @transform_1(%arg0: i32) -> (i32, i32) {
    %c0_i32 = arith.constant 0 : i32
    %c0_i32_0 = arith.constant 0 : i32
    return %arg0, %c0_i32 : i32, i32
  }
  func.func @transform_2(%arg0: i32) -> (i32, i32) {
    %c0_i32 = arith.constant 0 : i32
    %c0_i32_0 = arith.constant 0 : i32
    return %arg0, %c0_i32 : i32, i32
  }
  func.func @transform_3(%arg0: i32) -> (i32, i32) {
    %c0_i32 = arith.constant 0 : i32
    %c0_i32_0 = arith.constant 0 : i32
    return %arg0, %c0_i32 : i32, i32
  }
  func.func @transform_4(%arg0: i32) -> (i32, i32) {
    %c0_i32 = arith.constant 0 : i32
    %c0_i32_0 = arith.constant 0 : i32
    %c0_i32_1 = arith.constant 0 : i32
    return %c0_i32, %c0_i32_0 : i32, i32
  }
}

</mosaic_0001>

<bundles_post_ra>
// kernel: _lambda_.1
= control target key start
LH: loop header
LB: loop body
LE: loop exit
PB: predicated region body
PF: predicated region fallthrough
CT: control target
= control target key end

     0   :  { %vm70_vm0 = vcmask 7168   ;;  %s266_s0 = inlined_call_operand.vmem [shape: f32[8,1], index: 0, kind: input, shape index: {}]   ;;  %s267_s1 = inlined_call_operand.vmem [shape: f32[8,1], index: 1, kind: input, shape index: {}]   ;;  %s268_s2 = inlined_call_operand.vmem [shape: f32[8,1], index: 2, kind: input, shape index: {}]   ;;  %s269_s3 = inlined_call_operand.vmem [shape: f32[8,32], index: 3, kind: input, shape index: {}]   ;;  %s270_s4 = inlined_call_operand.hbm [shape: f32[1,1], index: 4, kind: output, shape index: {}]  }
   0x1   :  { %v28_v0 = vld [vmem:[%s266_s0] sm:$0xff] }
   0x2   :  { %v29_v1 = vld [vmem:[%s267_s1] sm:$0xff]  ;;  %v33_v4 = vsub.f32 1.0, %v28_v0 }
   0x3   :  { %v30_v2 = vld [vmem:[%s268_s2] sm:$0xff]  ;;  %v32_v3 = vmul.f32 %v29_v1, %v28_v0 }
   0x4   :  { %9 = vsyncpa [#allocation7], 0  ;;  %v34_v6 = vmul.f32 %v33_v4, %v30_v2  ;;  %vm25_vm1 = vcmask 0   ;;  %v204_v8 = vmov 0   ;;  %v205_v9 = vmov 0.0   ;;  %v31_v25 = vld [vmem:[%s269_s3] sm:$0xff] }
   0x5   :  { %v71_v5 = vsel %vm70_vm0, %v32_v3, 0.0  ;;  %172 = vset.pattern.permute.xlu1 %v204_v8  ;;  %26 = vst.msk [vmem:[#allocation4] sm:$0x1] %vm25_vm1, %v205_v9  ;;  %27 = vst.msk [vmem:[#allocation5] sm:$0x1] %vm25_vm1, %v205_v9  ;;  %173 = vset.pattern.permute.xlu0 %v204_v8  ;;  %vm42_vm2 = vcmask 261120   ;;  %v112_v57 = vlaneseq }
   0x6   :  { %72 = vadd.xlane.f32.xlu0 %v71_v5  ;;  %v86_v7 = vsel %vm70_vm0, %v34_v6, 0.0  ;;  %38 = vperm.xlu1 %172, %v32_v3   ;;  %vm22_vm3 = vcmask 253952   ;;  %s206_s22 = smov [#allocation6]  }
   0x7   :  { %23 = vst.msk [vmem:[#allocation2] sm:$0x1] %vm22_vm3, %v205_v9  ;;  %24 = vst.msk [vmem:[#allocation3] sm:$0x1] %vm22_vm3, %v205_v9  ;;  %v113_v58 = vshrl.u32 %v112_v57, 7  ;;  %s155_s23 = sshll.u32 %s206_s22, 4  ;;  %s156_s23 = int_to_ptr.vmem [resolvable:$true] %s155_s23 }
   0x8   :  { %s180_s24 = scalar_lea.vmem %s156_s23, 16  ;;  %s184_s25 = scalar_lea.vmem %s156_s23, 32 }
   0x9   :  { %v114_v59 = vsub.s32 0, %v113_v58  ;;  %p181_p0 = scmp.ne.s32.totalorder %s156_s23, %s180_s24  ;;  %p185_p1 = scmp.lt.s32.totalorder %s156_s23, %s156_s23 }
   0xa   :  { %87 = vadd.xlane.f32.xlu0 %v86_v7  ;;  %56 = vperm.xlu1 %172, %v34_v6   ;;  %p186_p2 = scmp.lt.s32.totalorder %s184_s25, %s180_s24 }
   0xc   :  { %v69_v39 = vld [vmem:[#allocation4] sm:$0x1]  ;;  %v85_v44 = vld [vmem:[#allocation5] sm:$0x1]  ;;  %p187_p3 = por %p186_p2, %p185_p1 }
   0xe   :  { %v35_v49 = vld [vmem:[#allocation2] sm:$0x1]  ;;  %v53_v50 = vld [vmem:[#allocation3] sm:$0x1]  ;;  %p188_p4 = pnand %p187_p3, %p181_p0 }
  0x85   :  { %v39_v24 = vpop.permute.xlu1 %38 }
  0x86   :  { %v41_v27 = vmul.f32 %v39_v24, %v31_v25 }
  0x88   :  { %v43_v29 = vsel %vm42_vm2, %v41_v27, 0.0 }
  0x89   :  { %v57_v26 = vpop.permute.xlu1 %56  ;;  %v44_v31 = vrot.slane %v43_v29, 4 }
  0x8a   :  { %v59_v28 = vmul.f32 %v57_v26, %v31_v25 }
  0x8b   :  { %v45_v33 = vadd.f32 %v44_v31, %v43_v29 }
  0x8c   :  { %v60_v30 = vsel %vm42_vm2, %v59_v28, 0.0 }
  0x8d   :  { %v61_v32 = vrot.slane %v60_v30, 4  ;;  %v46_v35 = vrot.slane %v45_v33, 2 }
  0x8f   :  { %v62_v34 = vadd.f32 %v61_v32, %v60_v30  ;;  %v47_v37 = vadd.f32 %v46_v35, %v45_v33 }
  0x91   :  { %v63_v36 = vrot.slane %v62_v34, 2  ;;  %v48_v41 = vrot.slane %v47_v37, 1 }
  0x93   :  { %v73_v10 = vpop.xlane.xlu0 %72  ;;  %v64_v38 = vadd.f32 %v63_v36, %v62_v34  ;;  %v49_v46 = vadd.f32 %v48_v41, %v47_v37 }
  0x94   :  { %v74_v11 = vrot.slane %v73_v10, 4 }
  0x95   :  { %v65_v42 = vrot.slane %v64_v38, 1  ;;  %v50_v51 = vadd.f32 %v49_v46, %v35_v49 }
  0x96   :  { %v75_v12 = vadd.f32 %v74_v11, %v73_v10 }
  0x97   :  { %v88_v13 = vpop.xlane.xlu0 %87  ;;  %v66_v47 = vadd.f32 %v65_v42, %v64_v38  ;;  %52 = vst.msk [vmem:[#allocation2] sm:$0x1] %vm22_vm3, %v50_v51 }
  0x98   :  { %v76_v14 = vrot.slane %v75_v12, 2  ;;  %v89_v15 = vrot.slane %v88_v13, 4 }
  0x99   :  { %v67_v52 = vadd.f32 %v66_v47, %v53_v50 }
  0x9a   :  { %v90_v16 = vadd.f32 %v89_v15, %v88_v13  ;;  %v77_v17 = vadd.f32 %v76_v14, %v75_v12 }
  0x9b   :  { %68 = vst.msk [vmem:[#allocation3] sm:$0x1] %vm22_vm3, %v67_v52 }
  0x9c   :  { %v91_v18 = vrot.slane %v90_v16, 2  ;;  %v78_v19 = vrot.slane %v77_v17, 1 }
  0x9e   :  { %v79_v20 = vadd.f32 %v78_v19, %v77_v17  ;;  %v92_v21 = vadd.f32 %v91_v18, %v90_v16  ;;  %v106_v0 = vld [vmem:[#allocation2] sm:$0x1] }
  0xa0   :  { %163 = vpush %v79_v20  ;;  %v93_v22 = vrot.slane %v92_v21, 1 }
  0xa2   :  { %v94_v23 = vadd.f32 %v93_v22, %v92_v21  ;;  %v117_v1 = vld [vmem:[#allocation3] sm:$0x1] }
  0xa4   :  { %165 = vpush %v94_v23 }
  0xd1   :  { %s164_s2 = spop %163 }
  0xd2   :  { %v81_v40 = vstv %s164_s2 }
  0xd3   :  { %v82_v43 = vadd.f32 %v81_v40, %v69_v39 }
  0xd5   :  { %84 = vst.msk [vmem:[#allocation4] sm:$0x1] %vm25_vm1, %v82_v43  ;;  %s166_s3 = spop %165 }
  0xd6   :  { %v96_v45 = vstv %s166_s3 }
  0xd7   :  { %v97_v48 = vadd.f32 %v96_v45, %v85_v44 }
  0xd9   :  { %98 = vst.msk [vmem:[#allocation5] sm:$0x1] %vm25_vm1, %v97_v48 }
  0xdc   :  { %v102_v53 = vld [vmem:[#allocation4] sm:$0x1] }
  0xdd   :  { %174 = vrcp.f32 %v102_v53 }
  0xe0   :  { %v104_v54 = vld [vmem:[#allocation5] sm:$0x1] }
  0xe1   :  { %176 = vrcp.f32 %v104_v54 }
  0xe7   :  { %v175_v55 = vpop.eup %174 }
  0xe8   :  { %109 = vperm.xlu0 %173, %v175_v55  }
  0xeb   :  { %v177_v56 = vpop.eup %176 }
  0xec   :  { %120 = vperm.xlu1 %172, %v177_v56  }
 0x167   :  { %v110_v60 = vpop.permute.xlu0 %109 }
 0x168   :  { %v115_v61 = vrot.slane %v110_v60, %v114_v59 }
 0x16a   :  { %v116_v2 = vmul.f32 %v115_v61, %v106_v0 }
 0x16b   :  { %v121_v62 = vpop.permute.xlu1 %120 }
 0x16c   :  { %v126_v63 = vrot.slane %v121_v62, %v114_v59 }
 0x16e   :  { %v127_v3 = vmul.f32 %v126_v63, %v117_v1 }
 0x170   :  { %v128_v4 = vsub.f32 %v116_v2, %v127_v3 }
 0x172   :  { %v129_v5 = vmul.f32 %v128_v4, %v128_v4 }
 0x174   :  { %v130_v6 = vsel %vm22_vm3, %v129_v5, 0.0 }
 0x175   :  { %131 = vadd.xlane.f32.xlu1 %v130_v6 }
 0x202   :  { %v132_v7 = vpop.xlane.xlu1 %131 }
 0x203   :  { %v133_v8 = vrot.slane %v132_v7, 4 }
 0x205   :  { %v134_v9 = vadd.f32 %v133_v8, %v132_v7 }
 0x207   :  { %v135_v10 = vrot.slane %v134_v9, 2 }
 0x209   :  { %v136_v11 = vadd.f32 %v135_v10, %v134_v9 }
 0x20b   :  { %v137_v12 = vrot.slane %v136_v11, 1 }
 0x20d   :  { %v138_v13 = vadd.f32 %v137_v12, %v136_v11 }
 0x20f   :  { %167 = vpush %v138_v13 }
 0x240   :  { %s168_s21 = spop %167 }
 0x241   :  { %v140_v14 = vstv %s168_s21 }
 0x242   :  { %178 = vrsqrt.f32 %v140_v14  ;;  %vm143_vm4 = vcmp.eq.f32.partialorder %v140_v14, inf  ;;  %v146_v17 = vand.u32 2147483648, %v140_v14  ;;  %vm145_vm5 = vcmp.eq.f32.partialorder %v140_v14, 0.0 }
 0x24c   :  { %v179_v15 = vpop.eup %178 }
 0x24d   :  { %v142_v16 = vmul.f32 %v179_v15, %v140_v14 }
 0x24f   :  { %v144_v18 = vsel %vm143_vm4, %v140_v14, %v142_v16 }
 0x250   :  { %v147_v19 = vsel %vm145_vm5, %v146_v17, %v144_v18 }
 0x251   :  { %148 = vst.msk [vmem:[#allocation6] sm:$0x1] %vm25_vm1, %v147_v19 }
 0x252   :  { %191 = shalt.err (!%p188_p4)
}
 0x253   :  { %s192_s28 = scalar_lea.hbm %s270_s4, 16 }
 0x254   :  { %p193_p5 = scmp.ne.s32.totalorder %s270_s4, %s192_s28  ;;  %p196_p6 = scmp.lt.u32.totalorder %s192_s28, %s270_s4 }
 0x256   :  { %p198_p7 = pnand %p196_p6, %p193_p5 }
 0x258   :  { %201 = shalt.err (!%p198_p7)
}
 0x259   :  { %158 = dma.vmem_to_hbm [thread:$0]  %s156_s23, 16, %s270_s4, [#allocation7]  }
 0x25a   :  { %202 = dma.done.wait [#allocation7], 16  }
 0x25b   :  { %203 = vsyncadd [#allocation7], 4294967280 }
 0x25c   :  { %162 = vsyncpa [#allocation7], 1 }

</bundles_post_ra>
